<compile_context>
chip_gen: v6e
topology: v6e:2x2x1
jax: 0.10.0
libtpu: 0.0.40
codegen_flags: <defaults>
</compile_context>

<pallas_src>
import functools

import jax
import jax.numpy as jnp
from jax.experimental import pallas as pl
from jax.experimental.pallas import tpu as pltpu


# Architecture constants fixed by the PyTorch module.
P_H1, P_H2 = 128, 64          # policy_net hidden sizes (per player)
V_H1, V_H2 = 256, 64          # value_net hidden sizes
H1 = 3 * P_H1 + V_H1          # 640  (fused layer-1 width)
H2 = 3 * P_H2 + V_H2          # 256  (fused layer-2 width)

# Slab-2 row layout (all offsets 16-row aligned -> clean bf16 sublane tiles).
B2_ROW = H1 + H2              # 896  : fused layer-2 bias row
B3_ROW = B2_ROW + 16          # 912  : fused layer-3 bias row
N_ROWS23 = B3_ROW + 16        # 928  : total slab-2 rows


def _round_up(x, m):
    return (x + m - 1) // m * m


def _cdiv(a, b):
    return -(-a // b)


def _fused_mlp_kernel(x_ref, w1_ref, w23_ref, out_ref):
    """Fused (3x shared policy + critic) MLP: 3 bf16 matmuls, f32 acc, 2 tanh.

    w1_slab  (bf16): rows [0,Fp) = W1_all, row Fp = b1_all          (width 640)
    w23_slab (bf16): rows [0,640)  cols [0,256) = W2_all
                     rows [640,896) cols [0,out) = W3_all
                     row 896 = b2_all, row 912 = b3_all             (width 256)
    """
    k1 = x_ref.shape[1]          # padded feature width == b1 row offset
    out_w = out_ref.shape[1]

    x = x_ref[...].astype(jnp.bfloat16)

    # ---- fused layer 1 ----
    w1 = w1_ref[0:k1, :]
    b1 = w1_ref[k1:k1 + 1, :].astype(jnp.float32)
    h1 = jnp.tanh(jnp.dot(x, w1, preferred_element_type=jnp.float32) + b1)

    # ---- fused layer 2 ----
    w2 = w23_ref[0:H1, 0:H2]
    b2 = w23_ref[B2_ROW:B2_ROW + 1, 0:H2].astype(jnp.float32)
    h2 = jnp.tanh(
        jnp.dot(h1.astype(jnp.bfloat16), w2, preferred_element_type=jnp.float32)
        + b2)

    # ---- fused layer 3 (no activation) ----
    w3 = w23_ref[H1:H1 + H2, 0:out_w]
    b3 = w23_ref[B3_ROW:B3_ROW + 1, 0:out_w].astype(jnp.float32)
    y = jnp.dot(h2.astype(jnp.bfloat16), w3, preferred_element_type=jnp.float32) + b3
    out_ref[...] = y.astype(out_ref.dtype)


def init_params(key, feature_dim: int, last_layer_dim_pi: int):
    """Deterministic synthetic parameters (weights stored as [in, out], f32)."""
    f3 = feature_dim // 3
    p3 = last_layer_dim_pi // 3

    def linear(key, fan_in, fan_out):
        kw, kb = jax.random.split(key)
        bound = 1.0 / jnp.sqrt(fan_in)
        w = jax.random.uniform(kw, (fan_in, fan_out), jnp.float32, -bound, bound)
        b = jax.random.uniform(kb, (1, fan_out), jnp.float32, -bound, bound)
        return w, b

    keys = jax.random.split(key, 6)
    w1p, b1p = linear(keys[0], f3, P_H1)
    w2p, b2p = linear(keys[1], P_H1, P_H2)
    w3p, b3p = linear(keys[2], P_H2, p3)
    w1v, b1v = linear(keys[3], feature_dim, V_H1)
    w2v, b2v = linear(keys[4], V_H1, V_H2)
    w3v, b3v = linear(keys[5], V_H2, 1)
    return (w1p, b1p, w2p, b2p, w3p, b3p, w1v, b1v, w2v, b2v, w3v, b3v)


def pack_params(params, feature_dim: int, last_layer_dim_pi: int):
    """Pack the 12 PyTorch-style linear params into two bf16 lane-aligned slabs.

    Block-diagonal layout: the shared policy weights are replicated on the
    diagonal (one block per player) and the value-net weights occupy the
    trailing block of each fused layer.  Biases live on dedicated 16-aligned
    rows.  Done once on the host; the hot path only sees the two slabs.
    """
    (w1p, b1p, w2p, b2p, w3p, b3p, w1v, b1v, w2v, b2v, w3v, b3v) = params
    f3 = feature_dim // 3
    p3 = last_layer_dim_pi // 3
    out_pad = _round_up(3 * p3 + 1, 128)        # lane-dense output width

    # ---- fused layer 1: (F, H1) ----
    w1_all = jnp.zeros((feature_dim, H1), jnp.float32)
    b1_all = jnp.zeros((H1,), jnp.float32)
    for i in range(3):
        w1_all = w1_all.at[i * f3:(i + 1) * f3, i * P_H1:(i + 1) * P_H1].set(w1p)
        b1_all = b1_all.at[i * P_H1:(i + 1) * P_H1].set(b1p.reshape(-1))
    w1_all = w1_all.at[:, 3 * P_H1:].set(w1v)
    b1_all = b1_all.at[3 * P_H1:].set(b1v.reshape(-1))

    # ---- fused layer 2: (H1, H2) ----
    w2_all = jnp.zeros((H1, H2), jnp.float32)
    b2_all = jnp.zeros((H2,), jnp.float32)
    for i in range(3):
        w2_all = w2_all.at[i * P_H1:(i + 1) * P_H1, i * P_H2:(i + 1) * P_H2].set(w2p)
        b2_all = b2_all.at[i * P_H2:(i + 1) * P_H2].set(b2p.reshape(-1))
    w2_all = w2_all.at[3 * P_H1:, 3 * P_H2:].set(w2v)
    b2_all = b2_all.at[3 * P_H2:].set(b2v.reshape(-1))

    # ---- fused layer 3: (H2, out_pad) ----
    w3_all = jnp.zeros((H2, out_pad), jnp.float32)
    b3_all = jnp.zeros((out_pad,), jnp.float32)
    for i in range(3):
        w3_all = w3_all.at[i * P_H2:(i + 1) * P_H2, i * p3:(i + 1) * p3].set(w3p)
        b3_all = b3_all.at[i * p3:(i + 1) * p3].set(b3p.reshape(-1))
    w3_all = w3_all.at[3 * P_H2:, 3 * p3:3 * p3 + 1].set(w3v)
    b3_all = b3_all.at[3 * p3].set(b3v.reshape(-1)[0])

    # ---- slab 1: W1_all + b1 row (bias at 16-aligned row = round_up(F,16)) ----
    b1_row = _round_up(feature_dim, 16)
    n_rows1 = b1_row + 16
    w1_slab = jnp.zeros((n_rows1, H1), jnp.float32)
    w1_slab = w1_slab.at[:feature_dim, :].set(w1_all)
    w1_slab = w1_slab.at[b1_row, :].set(b1_all)

    # ---- slab 2: W2_all, W3_all, b2 row (896), b3 row (912) ----
    w23_w = max(H2, out_pad)
    w23_slab = jnp.zeros((N_ROWS23, w23_w), jnp.float32)
    w23_slab = w23_slab.at[:H1, :H2].set(w2_all)
    w23_slab = w23_slab.at[H1:H1 + H2, :out_pad].set(w3_all)
    w23_slab = w23_slab.at[B2_ROW, :H2].set(b2_all)
    w23_slab = w23_slab.at[B3_ROW, :out_pad].set(b3_all)

    # bf16 slabs: MXU-native operands, half the DMA bytes / VMEM footprint.
    return w1_slab.astype(jnp.bfloat16), w23_slab.astype(jnp.bfloat16)


@functools.partial(jax.jit, static_argnames=("last_layer_dim_pi",))
def shared_network_policy_forward(features, w1_slab, w23_slab, *, last_layer_dim_pi):
    """Returns (actions, value) matching MySharedNetworkPolicy.forward."""
    B, F = features.shape
    p3 = last_layer_dim_pi // 3
    out_pad = _round_up(3 * p3 + 1, 128)
    f_pad = _round_up(F, 16)          # must match slab-1 bias-row offset

    # Batch tiling: balanced tiles (padding bounded to < 8 rows), >= 2 grid
    # steps whenever B > 16 so the "parallel" axis can shard across v7x's two
    # TensorCores, tile capped at 1024 rows (weights stay resident, so VMEM
    # grows only with x / h1 / out).
    b8 = _round_up(B, 8)
    min_tiles = 2 if B > 16 else 1
    n_tiles = max(min_tiles, _cdiv(b8, 1024))
    tm = _round_up(_cdiv(b8, n_tiles), 8)
    b_pad = _round_up(B, tm)

    x = features.astype(jnp.float32)
    if b_pad != B or f_pad != F:
        x = jnp.pad(x, ((0, b_pad - B), (0, f_pad - F)))

    out = pl.pallas_call(
        _fused_mlp_kernel,
        out_shape=jax.ShapeDtypeStruct((b_pad, out_pad), jnp.float32),
        grid_spec=pltpu.PrefetchScalarGridSpec(
            num_scalar_prefetch=0,
            grid=(b_pad // tm,),
            in_specs=[
                pl.BlockSpec((tm, f_pad), lambda i: (i, 0)),
                # Weight slabs: constant index_map -> fetched once, resident.
                pl.BlockSpec(w1_slab.shape, lambda i: (0, 0)),
                pl.BlockSpec(w23_slab.shape, lambda i: (0, 0)),
            ],
            out_specs=pl.BlockSpec((tm, out_pad), lambda i: (i, 0)),
        ),
        compiler_params=pltpu.CompilerParams(
            dimension_semantics=("parallel",)),
    )(x, w1_slab, w23_slab)

    actions = out[:B, :3 * p3]          # per-player actions concatenated
    value = out[:B, 3 * p3:3 * p3 + 1]  # critic scalar
    return actions, value


def _reference_forward(features, params):
    """Pure-JAX f32 reference identical to the PyTorch forward semantics."""
    (w1p, b1p, w2p, b2p, w3p, b3p, w1v, b1v, w2v, b2v, w3v, b3v) = params
    F = features.shape[-1]
    f3 = F // 3

    def policy(x):
        h = jnp.tanh(x @ w1p + b1p)
        h = jnp.tanh(h @ w2p + b2p)
        return h @ w3p + b3p

    chunks = [features[..., i * f3:(i + 1) * f3] for i in range(3)]
    actions = jnp.concatenate([policy(c) for c in chunks], axis=-1)

    v = jnp.tanh(features @ w1v + b1v)
    v = jnp.tanh(v @ w2v + b2v)
    value = v @ w3v + b3v
    return actions, value


if __name__ == "__main__":
    feature_dim = 24          # divisible by 3 -> per-player chunk of 8
    last_layer_dim_pi = 12    # divisible by 3 -> per-player actions of 4

    key = jax.random.PRNGKey(0)
    k_feat, k_params = jax.random.split(key)

    params = init_params(k_params, feature_dim, last_layer_dim_pi)
    w1_slab, w23_slab = pack_params(params, feature_dim, last_layer_dim_pi)

    # bf16 MXU operands -> relaxed tolerance vs. the f32 reference.
    ATOL = RTOL = 3e-2

    # Check both the single-tile (B=8) and multi-tile (B=40 -> 2 grid steps,
    # padded rows) paths.
    for batch in (8, 40):
        features = jax.random.normal(k_feat, (batch, feature_dim), jnp.float32)
        actions, value = shared_network_policy_forward(
            features, w1_slab, w23_slab, last_layer_dim_pi=last_layer_dim_pi)
        actions = jax.block_until_ready(actions)
        value = jax.block_until_ready(value)

        ref_actions, ref_value = _reference_forward(features, params)

        assert actions.shape == (batch, last_layer_dim_pi), actions.shape
        assert value.shape == (batch, 1), value.shape
        assert jnp.allclose(actions, ref_actions, atol=ATOL, rtol=RTOL)
        assert jnp.allclose(value, ref_value, atol=ATOL, rtol=RTOL)

    print("KERNEL_OK")
</pallas_src>

<mosaic_0001>
module attributes {stable_mosaic.version = 11 : i64} {
  func.func @_fused_mlp_kernel(%arg0: i32, %arg1: memref<8x32xf32, #tpu.memory_space<vmem>>, %arg2: memref<48x640xbf16, #tpu.memory_space<vmem>>, %arg3: memref<928x256xbf16, #tpu.memory_space<vmem>>, %arg4: memref<8x128xf32, #tpu.memory_space<vmem>>) attributes {dimension_semantics = [#tpu.dimension_semantics<parallel>], iteration_bounds = array<i64: 1>, scalar_prefetch = 0 : i64, scratch_operands = 0 : i64, tpu.core_type = #tpu.core_type<tc>, window_params = [{transform_indices = @transform_0, window_bounds = array<i64: 8, 32>}, {pipeline_mode = #tpu.pipeline_mode<synchronous>, transform_indices = @transform_1, window_bounds = array<i64: 48, 640>}, {pipeline_mode = #tpu.pipeline_mode<synchronous>, transform_indices = @transform_2, window_bounds = array<i64: 928, 256>}, {transform_indices = @transform_3, window_bounds = array<i64: 8, 128>}]} {
    %c0 = arith.constant 0 : index
    %c0_0 = arith.constant 0 : index
    %0 = vector.load %arg1[%c0, %c0_0] : memref<8x32xf32, #tpu.memory_space<vmem>>, vector<8x32xf32>
    %1 = arith.truncf %0 : vector<8x32xf32> to vector<8x32xbf16>
    %c0_1 = arith.constant 0 : index
    %c0_2 = arith.constant 0 : index
    %2 = vector.load %arg2[%c0_1, %c0_2] : memref<48x640xbf16, #tpu.memory_space<vmem>>, vector<32x640xbf16>
    %c32 = arith.constant 32 : index
    %c0_3 = arith.constant 0 : index
    %3 = vector.load %arg2[%c32, %c0_3] : memref<48x640xbf16, #tpu.memory_space<vmem>>, vector<1x640xbf16>
    %4 = arith.extf %3 : vector<1x640xbf16> to vector<1x640xf32>
    %cst = arith.constant dense<0.000000e+00> : vector<8x640xf32>
    %5 = tpu.matmul %1, %2, %cst {dimension_numbers = #tpu.dot_dimension_numbers<[1], [0], [0], [1], [0, 0, 1, 1], [], []>} : vector<8x32xbf16>, vector<32x640xbf16>, vector<8x640xf32> -> vector<8x640xf32>
    %6 = vector.broadcast %4 : vector<1x640xf32> to vector<8x640xf32>
    %7 = arith.addf %5, %6 : vector<8x640xf32>
    %8 = math.tanh %7 : vector<8x640xf32>
    %c0_4 = arith.constant 0 : index
    %c0_5 = arith.constant 0 : index
    %9 = vector.load %arg3[%c0_4, %c0_5] : memref<928x256xbf16, #tpu.memory_space<vmem>>, vector<640x256xbf16>
    %c896 = arith.constant 896 : index
    %c0_6 = arith.constant 0 : index
    %10 = vector.load %arg3[%c896, %c0_6] : memref<928x256xbf16, #tpu.memory_space<vmem>>, vector<1x256xbf16>
    %11 = arith.extf %10 : vector<1x256xbf16> to vector<1x256xf32>
    %12 = arith.truncf %8 : vector<8x640xf32> to vector<8x640xbf16>
    %cst_7 = arith.constant dense<0.000000e+00> : vector<8x256xf32>
    %13 = tpu.matmul %12, %9, %cst_7 {dimension_numbers = #tpu.dot_dimension_numbers<[1], [0], [0], [1], [0, 0, 1, 1], [], []>} : vector<8x640xbf16>, vector<640x256xbf16>, vector<8x256xf32> -> vector<8x256xf32>
    %14 = vector.broadcast %11 : vector<1x256xf32> to vector<8x256xf32>
    %15 = arith.addf %13, %14 : vector<8x256xf32>
    %16 = math.tanh %15 : vector<8x256xf32>
    %c640 = arith.constant 640 : index
    %c0_8 = arith.constant 0 : index
    %17 = vector.load %arg3[%c640, %c0_8] : memref<928x256xbf16, #tpu.memory_space<vmem>>, vector<256x128xbf16>
    %c912 = arith.constant 912 : index
    %c0_9 = arith.constant 0 : index
    %18 = vector.load %arg3[%c912, %c0_9] : memref<928x256xbf16, #tpu.memory_space<vmem>>, vector<1x128xbf16>
    %19 = arith.extf %18 : vector<1x128xbf16> to vector<1x128xf32>
    %20 = arith.truncf %16 : vector<8x256xf32> to vector<8x256xbf16>
    %cst_10 = arith.constant dense<0.000000e+00> : vector<8x128xf32>
    %21 = tpu.matmul %20, %17, %cst_10 {dimension_numbers = #tpu.dot_dimension_numbers<[1], [0], [0], [1], [0, 0, 1, 1], [], []>} : vector<8x256xbf16>, vector<256x128xbf16>, vector<8x128xf32> -> vector<8x128xf32>
    %22 = vector.broadcast %19 : vector<1x128xf32> to vector<8x128xf32>
    %23 = arith.addf %21, %22 : vector<8x128xf32>
    %c0_11 = arith.constant 0 : index
    %c0_12 = arith.constant 0 : index
    %24 = vector.load %arg4[%c0_11, %c0_12] : memref<8x128xf32, #tpu.memory_space<vmem>>, vector<8x128xf32>
    tpu.vector_store %arg4[%c0_11, %c0_12], %23 {strides = array<i32>} : memref<8x128xf32, #tpu.memory_space<vmem>>, vector<8x128xf32>,
    return
  }
  func.func @transform_0(%arg0: i32) -> (i32, i32) {
    %c0_i32 = arith.constant 0 : i32
    %c0_i32_0 = arith.constant 0 : i32
    return %arg0, %c0_i32 : i32, i32
  }
  func.func @transform_1(%arg0: i32) -> (i32, i32) {
    %c0_i32 = arith.constant 0 : i32
    %c0_i32_0 = arith.constant 0 : i32
    %c0_i32_1 = arith.constant 0 : i32
    return %c0_i32, %c0_i32_0 : i32, i32
  }
  func.func @transform_2(%arg0: i32) -> (i32, i32) {
    %c0_i32 = arith.constant 0 : i32
    %c0_i32_0 = arith.constant 0 : i32
    %c0_i32_1 = arith.constant 0 : i32
    return %c0_i32, %c0_i32_0 : i32, i32
  }
  func.func @transform_3(%arg0: i32) -> (i32, i32) {
    %c0_i32 = arith.constant 0 : i32
    %c0_i32_0 = arith.constant 0 : i32
    return %arg0, %c0_i32 : i32, i32
  }
}

</mosaic_0001>

<bundles_post_ra>
// kernel: shared_network_policy_forward.1
= control target key start
LH: loop header
LB: loop body
LE: loop exit
PB: predicated region body
PF: predicated region fallthrough
CT: control target
= control target key end

     0   :  { %8 = vsyncpa [#allocation3], 0  ;;  %s1488_s0 = inlined_call_operand.vmem [shape: f32[8,32], index: 0, kind: input, shape index: {}]   ;;  %s1489_s1 = inlined_call_operand.hbm [shape: bf16[48,640], index: 1, kind: input, shape index: {}]   ;;  %s1490_s2 = inlined_call_operand.hbm [shape: bf16[928,256], index: 2, kind: input, shape index: {}]   ;;  %s1491_s3 = inlined_call_operand.vmem [shape: f32[8,128], index: 3, kind: output, shape index: {}]  }
   0x1   :  { %9 = vsyncpa [#allocation5], 0  ;;  %s1431_s12 = smov [#allocation2]  }
   0x2   :  { %s17_s13 = sshll.u32 %s1431_s12, 4  ;;  %s18_s13 = int_to_ptr.vmem [resolvable:$true] %s17_s13 }
   0x3   :  { %s1395_s14 = scalar_lea.vmem %s18_s13, 1920  ;;  %p1400_p1 = scmp.lt.s32.totalorder %s18_s13, %s18_s13 }
   0x4   :  { %p1396_p0 = scmp.ne.s32.totalorder %s18_s13, %s1395_s14  ;;  %p1401_p2 = scmp.lt.s32.totalorder %s1395_s14, %s1395_s14 }
   0x6   :  { %p1402_p3 = por %p1401_p2, %p1400_p1 }
   0x8   :  { %p1403_p4 = pnand %p1402_p3, %p1396_p0 }
   0xa   :  { %1406 = shalt.err (!%p1403_p4)
}
   0xb   :  { %s1432_s15 = smov 320   ;;  %s1433_s16 = smov 20  }
   0xc   :  { %23 = dma.hbm_to_vmem [thread:$0]  %s1489_s1, 1920, %s18_s13, [#allocation3], %s1432_s15, %s1432_s15, %s1433_s16  }
   0xd   :  { %s1434_s19 = smov [#allocation4]  }
   0xe   :  { %s29_s20 = sshll.u32 %s1434_s19, 4  ;;  %s30_s20 = int_to_ptr.vmem [resolvable:$true] %s29_s20 }
   0xf   :  { %s1415_s21 = scalar_lea.vmem %s30_s20, 14848  ;;  %p1420_p6 = scmp.lt.s32.totalorder %s30_s20, %s30_s20 }
  0x10   :  { %p1416_p5 = scmp.ne.s32.totalorder %s30_s20, %s1415_s21  ;;  %p1421_p7 = scmp.lt.s32.totalorder %s1415_s21, %s1415_s21 }
  0x12   :  { %p1422_p8 = por %p1421_p7, %p1420_p6 }
  0x14   :  { %p1423_p9 = pnand %p1422_p8, %p1416_p5 }
  0x16   :  { %1426 = shalt.err (!%p1423_p9)
}
  0x17   :  { %s1435_s22 = smov 128   ;;  %s1436_s23 = smov 8  }
  0x18   :  { %35 = dma.hbm_to_vmem [thread:$0]  %s1490_s2, 14848, %s30_s20, [#allocation5], %s1435_s22, %s1435_s22, %s1436_s23  }
  0x19   :  { %1427 = dma.done.wait [#allocation3], 1920  }
  0x1a   :  { %1428 = vsyncadd [#allocation3], 4294965376 }
  0x1b   :  { %1429 = dma.done.wait [#allocation5], 14848  }
  0x1c   :  { %1430 = vsyncadd [#allocation5], 4294952448  ;;  %v1437_v0 = vmov 0   ;;  %v1223_v1 = vld [vmem:[#allocation2 + $0x2c] ss:$20 sps:$4 sm:$0xff]   ;;  %vm137_vm0 = vcmask 261120  }
  0x1d   :  { %173 = vmatprep.mubr.bf16.mxu0 %v1437_v0  ;;  %214 = vmatprep.mubr.bf16.mxu1 %v1437_v0  ;;  %v1225_v2 = vld [vmem:[#allocation2 + $0x28] ss:$20 sps:$4 sm:$0xff]   ;;  %v1228_v4 = vld [vmem:[#allocation2 + $0x30] ss:$20 sps:$4 sm:$0xff]   ;;  %v1231_v6 = vld [vmem:[#allocation2] ss:$20 sps:$4 sm:$0xff]  }
  0x1e   :  { %153 = vmatprep.subr.bf16.mxu0 %v1223_v1  ;;  %v1226_v3 = vld [vmem:[#allocation2 + $0x34] ss:$20 sps:$4 sm:$0xff]   ;;  %v1229_v5 = vld [vmem:[#allocation2 + $0x4] ss:$20 sps:$4 sm:$0xff]   ;;  %v1232_v7 = vld [vmem:[#allocation2 + $0xc] ss:$20 sps:$4 sm:$0xff]  }
  0x1f   :  { %154 = vmatpush1.bf16.msra.mxu0 %v1225_v2  ;;  %194 = vmatprep.subr.bf16.mxu1 %v1226_v3  ;;  %v1234_v8 = vld [vmem:[#allocation2 + $0x8] ss:$20 sps:$4 sm:$0xff]   ;;  %v43_v9 = vld [vmem:[%s1488_s0] sm:$0xff]  ;;  %v1235_v11 = vld [vmem:[#allocation2 + $0x38] ss:$20 sps:$4 sm:$0xff]   ;;  %v1438_v12 = vmov 0.0  }
  0x20   :  { %195 = vmatpush1.bf16.msra.mxu1 %v1228_v4  ;;  %155 = vmatprep.subr.bf16.mxu0 %v1229_v5  ;;  %v44_v10 = vpack.c.bf16 %v43_v9, %v43_v9  ;;  %v1239_v13 = vld [vmem:[#allocation4 + $0x74] ss:$8 sps:$4 sm:$0xff]   ;;  %v1237_v14 = vld [vmem:[#allocation4 + $0x70] ss:$8 sps:$4 sm:$0xff]   ;;  %vm1439_vm1 = vmmov 0  }
  0x21   :  { %196 = vmatprep.subr.bf16.mxu1 %v1232_v7  ;;  %v1236_v15 = vld [vmem:[#allocation2 + $0x10] ss:$20 sps:$4 sm:$0xff]   ;;  %v1242_v17 = vld [vmem:[#allocation4 + $0x174] ss:$8 sps:$4 sm:$0xff]   ;;  %v1243_v18 = vld [vmem:[#allocation4 + $0x60] ss:$8 sps:$4 sm:$0xff]  }
  0x22   :  { %v1245_v16 = vld [vmem:[#allocation4 + $0x64] ss:$8 sps:$4 sm:$0xff]   ;;  %v1251_v19 = vld [vmem:[#allocation4 + $0x54] ss:$8 sps:$4 sm:$0xff]   ;;  %v1240_v20 = vld [vmem:[#allocation4 + $0x170] ss:$8 sps:$4 sm:$0xff]  }
  0x23   :  { %156 = vmatpush1.bf16.msra.mxu0 %v1231_v6  ;;  %v1248_v21 = vld [vmem:[#allocation4 + $0x164] ss:$8 sps:$4 sm:$0xff]   ;;  %v1249_v22 = vld [vmem:[#allocation4 + $0x50] ss:$8 sps:$4 sm:$0xff]   ;;  %v1246_v24 = vld [vmem:[#allocation4 + $0x160] ss:$8 sps:$4 sm:$0xff]  }
  0x24   :  { %1206 = vmatprep.subr.bf16.mxu0 %v1438_v12  ;;  %197 = vmatpush1.bf16.msra.mxu1 %v1234_v8  ;;  %v1257_v23 = vld [vmem:[#allocation4 + $0x44] ss:$8 sps:$4 sm:$0xff]   ;;  %v1254_v25 = vld [vmem:[#allocation4 + $0x154] ss:$8 sps:$4 sm:$0xff]   ;;  %v1255_v26 = vld [vmem:[#allocation4 + $0x40] ss:$8 sps:$4 sm:$0xff]  }
  0x25   :  { %764 = vmatprep.subr.bf16.mxu1 %v1239_v13  ;;  %v1263_v27 = vld [vmem:[#allocation4 + $0x34] ss:$8 sps:$4 sm:$0xff]   ;;  %v1252_v28 = vld [vmem:[#allocation4 + $0x150] ss:$8 sps:$4 sm:$0xff]   ;;  %v1260_v29 = vld [vmem:[#allocation4 + $0x144] ss:$8 sps:$4 sm:$0xff]  }
  0x26   :  { %1082 = vmatmul.mubr.msk.bf16.vlgmr.msra.gmra.mxu0 %vm137_vm0, %v44_v10  ;;  %v1261_v30 = vld [vmem:[#allocation4 + $0x30] ss:$8 sps:$4 sm:$0xff]   ;;  %v1269_v31 = vld [vmem:[#allocation4 + $0x24] ss:$8 sps:$4 sm:$0xff]   ;;  %v1258_v32 = vld [vmem:[#allocation4 + $0x140] ss:$8 sps:$4 sm:$0xff]  }
  0x27   :  { %1207 = vmatpush3.bf16.msra.mxu0 %v1235_v11  ;;  %1210 = vmatprep.mubr.msk.bf16.mxu0 %vm1439_vm1, %v1438_v12  ;;  %v1266_v33 = vld [vmem:[#allocation4 + $0x134] ss:$8 sps:$4 sm:$0xff]   ;;  %v1267_v34 = vld [vmem:[#allocation4 + $0x20] ss:$8 sps:$4 sm:$0xff]   ;;  %v1264_v36 = vld [vmem:[#allocation4 + $0x130] ss:$8 sps:$4 sm:$0xff]  }
  0x28   :  { %1083 = vmatmul.mubr.msk.bf16.vlgmr.msra.gmra.mxu1 %vm137_vm0, %v44_v10  ;;  %1208 = vmatprep.subr.bf16.mxu0 %v1438_v12  ;;  %v1275_v35 = vld [vmem:[#allocation4 + $0x14] ss:$8 sps:$4 sm:$0xff]   ;;  %v1272_v37 = vld [vmem:[#allocation4 + $0x124] ss:$8 sps:$4 sm:$0xff]   ;;  %v1273_v38 = vld [vmem:[#allocation4 + $0x10] ss:$8 sps:$4 sm:$0xff]  }
  0x29   :  { %765 = vmatpush1.bf16.msra.mxu1 %v1237_v14  ;;  %v1281_v39 = vld [vmem:[#allocation4 + $0x4] ss:$8 sps:$4 sm:$0xff]   ;;  %v1270_v40 = vld [vmem:[#allocation4 + $0x120] ss:$8 sps:$4 sm:$0xff]   ;;  %v1278_v41 = vld [vmem:[#allocation4 + $0x114] ss:$8 sps:$4 sm:$0xff]  }
  0x2a   :  { %766 = vmatprep.subr.bf16.mxu1 %v1245_v16  ;;  %v1279_v42 = vld [vmem:[#allocation4] ss:$8 sps:$4 sm:$0xff]   ;;  %v1287_v43 = vld [vmem:[#allocation4 + $0xf4] ss:$8 sps:$4 sm:$0xff]   ;;  %v1276_v44 = vld [vmem:[#allocation4 + $0x110] ss:$8 sps:$4 sm:$0xff]   ;;  %v65_v16 = vlaneseq }
  0x2b   :  { %1209 = vmatpush3.bf16.msra.mxu0 %v1236_v15  ;;  %v1284_v45 = vld [vmem:[#allocation4 + $0x104] ss:$8 sps:$4 sm:$0xff]   ;;  %v1285_v46 = vld [vmem:[#allocation4 + $0xf0] ss:$8 sps:$4 sm:$0xff]   ;;  %v1282_v48 = vld [vmem:[#allocation4 + $0x100] ss:$8 sps:$4 sm:$0xff]  }
  0x2c   :  { %805 = vmatprep.subr.bf16.mxu0 %v1242_v17  ;;  %v1293_v47 = vld [vmem:[#allocation4 + $0xe4] ss:$8 sps:$4 sm:$0xff]   ;;  %v1290_v49 = vld [vmem:[#allocation4 + $0x1f4] ss:$8 sps:$4 sm:$0xff]   ;;  %v1291_v50 = vld [vmem:[#allocation4 + $0xe0] ss:$8 sps:$4 sm:$0xff]  }
  0x2d   :  { %767 = vmatpush1.bf16.msra.mxu1 %v1243_v18  ;;  %v1299_v51 = vld [vmem:[#allocation4 + $0xd4] ss:$8 sps:$4 sm:$0xff]   ;;  %v1288_v52 = vld [vmem:[#allocation4 + $0x1f0] ss:$8 sps:$4 sm:$0xff]   ;;  %v1296_v53 = vld [vmem:[#allocation4 + $0x1e4] ss:$8 sps:$4 sm:$0xff]  }
  0x2e   :  { %1211 = vmatmul.mubr.msk.bf16.vlgmr.msra.gmra.mxu0 %vm137_vm0, %v44_v10  ;;  %768 = vmatprep.subr.bf16.mxu1 %v1251_v19  ;;  %v1297_v54 = vld [vmem:[#allocation4 + $0xd0] ss:$8 sps:$4 sm:$0xff]   ;;  %v1294_v55 = vld [vmem:[#allocation4 + $0x1e0] ss:$8 sps:$4 sm:$0xff]   ;;  %v1302_v56 = vld [vmem:[#allocation4 + $0x1d4] ss:$8 sps:$4 sm:$0xff]  }
  0x2f   :  { %806 = vmatpush1.bf16.msra.mxu0 %v1240_v20  ;;  %v1300_v57 = vld [vmem:[#allocation4 + $0x1d0] ss:$8 sps:$4 sm:$0xff]   ;;  %v1305_v58 = vld [vmem:[#allocation4 + $0xc4] ss:$8 sps:$4 sm:$0xff]   ;;  %v1303_v59 = vld [vmem:[#allocation4 + $0xc0] ss:$8 sps:$4 sm:$0xff]  }
  0x30   :  { %807 = vmatprep.subr.bf16.mxu0 %v1248_v21  ;;  %v1308_v60 = vld [vmem:[#allocation4 + $0x1c4] ss:$8 sps:$4 sm:$0xff]   ;;  %v1306_v61 = vld [vmem:[#allocation4 + $0x1c0] ss:$8 sps:$4 sm:$0xff]   ;;  %v1311_v62 = vld [vmem:[#allocation4 + $0xb4] ss:$8 sps:$4 sm:$0xff]  }
  0x31   :  { %769 = vmatpush1.bf16.msra.mxu1 %v1249_v22  ;;  %v1309_v63 = vld [vmem:[#allocation4 + $0xb0] ss:$8 sps:$4 sm:$0xff]   ;;  %v1314_v1 = vld [vmem:[#allocation4 + $0x1b4] ss:$8 sps:$4 sm:$0xff]   ;;  %v1317_v3 = vld [vmem:[#allocation4 + $0xa4] ss:$8 sps:$4 sm:$0xff]  }
  0x32   :  { %770 = vmatprep.subr.bf16.mxu1 %v1257_v23  ;;  %v1312_v2 = vld [vmem:[#allocation4 + $0x1b0] ss:$8 sps:$4 sm:$0xff]   ;;  %v1315_v4 = vld [vmem:[#allocation4 + $0xa0] ss:$8 sps:$4 sm:$0xff]   ;;  %v1320_v5 = vld [vmem:[#allocation4 + $0x1a4] ss:$8 sps:$4 sm:$0xff]  }
  0x33   :  { %808 = vmatpush1.bf16.msra.mxu0 %v1246_v24  ;;  %v1318_v6 = vld [vmem:[#allocation4 + $0x1a0] ss:$8 sps:$4 sm:$0xff]   ;;  %v1323_v7 = vld [vmem:[#allocation4 + $0x94] ss:$8 sps:$4 sm:$0xff]   ;;  %v1321_v8 = vld [vmem:[#allocation4 + $0x90] ss:$8 sps:$4 sm:$0xff]  }
  0x34   :  { %809 = vmatprep.subr.bf16.mxu0 %v1254_v25  ;;  %v1326_v9 = vld [vmem:[#allocation4 + $0x194] ss:$8 sps:$4 sm:$0xff]   ;;  %v1324_v10 = vld [vmem:[#allocation4 + $0x190] ss:$8 sps:$4 sm:$0xff]   ;;  %v1329_v11 = vld [vmem:[#allocation4 + $0x84] ss:$8 sps:$4 sm:$0xff]  }
  0x35   :  { %771 = vmatpush1.bf16.msra.mxu1 %v1255_v26  ;;  %v1327_v12 = vld [vmem:[#allocation4 + $0x80] ss:$8 sps:$4 sm:$0xff]   ;;  %v1332_v13 = vld [vmem:[#allocation4 + $0x184] ss:$8 sps:$4 sm:$0xff]   ;;  %v1335_v15 = vld [vmem:[#allocation4 + $0x274] ss:$8 sps:$4 sm:$0xff]  }
  0x36   :  { %772 = vmatprep.subr.bf16.mxu1 %v1263_v27  ;;  %v1330_v14 = vld [vmem:[#allocation4 + $0x180] ss:$8 sps:$4 sm:$0xff]   ;;  %v66_v17 = vshrl.u32 %v65_v16, 7  ;;  %v57_v18 = vld [vmem:[#allocation2 + $0x50] sm:$0x11] }
  0x37   :  { %810 = vmatpush1.bf16.msra.mxu0 %v1252_v28  ;;  %v58_v19 = vld [vmem:[#allocation2 + $0x58] sm:$0x11]  ;;  %v60_v20 = vunpack.c.l.bf16 %v57_v18  ;;  %v61_v22 = vunpack.c.h.bf16 %v57_v18  ;;  %v1365_v18 = vld [vmem:[#allocation4 + $0x330] ss:$8 sps:$4 sm:$0xff]  }
  0x38   :  { %811 = vmatprep.subr.bf16.mxu0 %v1260_v29  ;;  %v1474_v21 = vsub.s32 0, %v66_v17  ;;  %v62_v23 = vunpack.c.l.bf16 %v58_v19  ;;  %v63_v25 = vunpack.c.h.bf16 %v58_v19  ;;  %v1363_v16 = vld [vmem:[#allocation4 + $0x340] ss:$8 sps:$4 sm:$0xff]   ;;  %v1366_v19 = vld [vmem:[#allocation4 + $0x2b0] ss:$8 sps:$4 sm:$0xff]  }
  0x39   :  { %773 = vmatpush1.bf16.msra.mxu1 %v1261_v30  ;;  %v1364_v17 = vld [vmem:[#allocation4 + $0x2c0] ss:$8 sps:$4 sm:$0xff]  }
  0x3a   :  { %774 = vmatprep.subr.bf16.mxu1 %v1269_v31  ;;  %v68_v24 = vrot.slane %v60_v20, %v1474_v21  ;;  %v72_v26 = vrot.slane %v61_v22, %v1474_v21  ;;  %v76_v27 = vrot.slane %v62_v23, %v1474_v21  ;;  %v80_v30 = vrot.slane %v63_v25, %v1474_v21  ;;  %v1367_v20 = vld [vmem:[#allocation4 + $0x320] ss:$8 sps:$4 sm:$0xff]   ;;  %v1369_v23 = vld [vmem:[#allocation4 + $0x310] ss:$8 sps:$4 sm:$0xff]  }
  0x3b   :  { %812 = vmatpush1.bf16.msra.mxu0 %v1258_v32  ;;  %v1368_v22 = vld [vmem:[#allocation4 + $0x2a0] ss:$8 sps:$4 sm:$0xff]  }
  0x3c   :  { %813 = vmatprep.subr.bf16.mxu0 %v1266_v33  ;;  %v1371_v25 = vld [vmem:[#allocation4 + $0x300] ss:$8 sps:$4 sm:$0xff]  }
  0x3d   :  { %775 = vmatpush1.bf16.msra.mxu1 %v1267_v34 }
  0x3e   :  { %776 = vmatprep.subr.bf16.mxu1 %v1275_v35 }
  0x3f   :  { %814 = vmatpush1.bf16.msra.mxu0 %v1264_v36 }
  0x40   :  { %815 = vmatprep.subr.bf16.mxu0 %v1272_v37 }
  0x41   :  { %777 = vmatpush1.bf16.msra.mxu1 %v1273_v38 }
  0x42   :  { %778 = vmatprep.subr.bf16.mxu1 %v1281_v39 }
  0x43   :  { %816 = vmatpush1.bf16.msra.mxu0 %v1270_v40 }
  0x44   :  { %817 = vmatprep.subr.bf16.mxu0 %v1278_v41 }
  0x45   :  { %779 = vmatpush1.bf16.msra.mxu1 %v1279_v42 }
  0x46   :  { %780 = vmatprep.subr.bf16.mxu1 %v1287_v43 }
  0x47   :  { %818 = vmatpush1.bf16.msra.mxu0 %v1276_v44 }
  0x48   :  { %819 = vmatprep.subr.bf16.mxu0 %v1284_v45 }
  0x49   :  { %781 = vmatpush2.bf16.msra.mxu1 %v1285_v46 }
  0x4a   :  { %782 = vmatprep.subr.bf16.mxu1 %v1293_v47 }
  0x4b   :  { %820 = vmatpush1.bf16.msra.mxu0 %v1282_v48 }
  0x4c   :  { %821 = vmatprep.subr.bf16.mxu0 %v1290_v49  ;;  %v1333_v49 = vld [vmem:[#allocation4 + $0x270] ss:$8 sps:$4 sm:$0xff]  }
  0x4d   :  { %783 = vmatpush2.bf16.msra.mxu1 %v1291_v50  ;;  %v59_v50 = vld [vmem:[#allocation2 + $0x60] sm:$0x1] }
  0x4e   :  { %784 = vmatprep.subr.bf16.mxu1 %v1299_v51 }
  0x4f   :  { %822 = vmatpush2.bf16.msra.mxu0 %v1288_v52 }
  0x50   :  { %823 = vmatprep.subr.bf16.mxu0 %v1296_v53 }
  0x51   :  { %785 = vmatpush2.bf16.msra.mxu1 %v1297_v54  ;;  %v1338_v54 = vld [vmem:[#allocation4 + $0x264] ss:$8 sps:$4 sm:$0xff]  }
  0x52   :  { %786 = vmatprep.subr.bf16.mxu1 %v1305_v58  ;;  %v1341_v58 = vld [vmem:[#allocation4 + $0x254] ss:$8 sps:$4 sm:$0xff]  }
  0x53   :  { %824 = vmatpush2.bf16.msra.mxu0 %v1294_v55 }
  0x54   :  { %825 = vmatprep.subr.bf16.mxu0 %v1302_v56  ;;  %v64_v56 = vunpack.c.l.bf16 %v59_v50 }
  0x55   :  { %787 = vmatpush2.bf16.msra.mxu1 %v1303_v59 }
  0x56   :  { %788 = vmatprep.subr.bf16.mxu1 %v1311_v62  ;;  %v84_v59 = vrot.slane %v64_v56, %v1474_v21 }
  0x57   :  { %826 = vmatpush2.bf16.msra.mxu0 %v1300_v57  ;;  %v1336_v57 = vld [vmem:[#allocation4 + $0x260] ss:$8 sps:$4 sm:$0xff]  }
  0x58   :  { %827 = vmatprep.subr.bf16.mxu0 %v1308_v60  ;;  %v1339_v60 = vld [vmem:[#allocation4 + $0x250] ss:$8 sps:$4 sm:$0xff]  }
  0x59   :  { %789 = vmatpush2.bf16.msra.mxu1 %v1309_v63  ;;  %v1342_v63 = vld [vmem:[#allocation4 + $0x240] ss:$8 sps:$4 sm:$0xff]  }
  0x5a   :  { %790 = vmatprep.subr.bf16.mxu1 %v1317_v3  ;;  %v1350_v3 = vld [vmem:[#allocation4 + $0x224] ss:$8 sps:$4 sm:$0xff]  }
  0x5b   :  { %828 = vmatpush2.bf16.msra.mxu0 %v1306_v61  ;;  %v1344_v61 = vld [vmem:[#allocation4 + $0x244] ss:$8 sps:$4 sm:$0xff]  }
  0x5c   :  { %829 = vmatprep.subr.bf16.mxu0 %v1314_v1  ;;  %v1347_v1 = vld [vmem:[#allocation4 + $0x234] ss:$8 sps:$4 sm:$0xff]  }
  0x5d   :  { %791 = vmatpush2.bf16.msra.mxu1 %v1315_v4  ;;  %v1348_v4 = vld [vmem:[#allocation4 + $0x220] ss:$8 sps:$4 sm:$0xff]  }
  0x5e   :  { %792 = vmatprep.subr.bf16.mxu1 %v1323_v7 }
  0x5f   :  { %830 = vmatpush2.bf16.msra.mxu0 %v1312_v2  ;;  %v1345_v2 = vld [vmem:[#allocation4 + $0x230] ss:$8 sps:$4 sm:$0xff]  }
  0x60   :  { %831 = vmatprep.subr.bf16.mxu0 %v1320_v5  ;;  %v1351_v5 = vld [vmem:[#allocation4 + $0x210] ss:$8 sps:$4 sm:$0xff]  }
  0x61   :  { %793 = vmatpush2.bf16.msra.mxu1 %v1321_v8  ;;  %v1354_v8 = vld [vmem:[#allocation4 + $0x200] ss:$8 sps:$4 sm:$0xff]  }
  0x62   :  { %794 = vmatprep.subr.bf16.mxu1 %v1329_v11  ;;  %v1358_v11 = vld [vmem:[#allocation4 + $0x2f0] ss:$8 sps:$4 sm:$0xff]  }
  0x63   :  { %832 = vmatpush2.bf16.msra.mxu0 %v1318_v6  ;;  %v1356_v6 = vld [vmem:[#allocation4 + $0x204] ss:$8 sps:$4 sm:$0xff]  }
  0x64   :  { %833 = vmatprep.subr.bf16.mxu0 %v1326_v9 }
  0x65   :  { %795 = vmatpush2.bf16.msra.mxu1 %v1327_v12  ;;  %v1359_v12 = vld [vmem:[#allocation4 + $0x360] ss:$8 sps:$4 sm:$0xff]  }
  0x66   :  { %846 = vmatprep.subr.bf16.mxu1 %v1335_v15  ;;  %v1362_v15 = vld [vmem:[#allocation4 + $0x2d0] ss:$8 sps:$4 sm:$0xff]  }
  0x67   :  { %834 = vmatpush2.bf16.msra.mxu0 %v1324_v10  ;;  %v1357_v10 = vld [vmem:[#allocation4 + $0x370] ss:$8 sps:$4 sm:$0xff]  }
  0x68   :  { %835 = vmatprep.subr.bf16.mxu0 %v1332_v13  ;;  %v1360_v13 = vld [vmem:[#allocation4 + $0x2e0] ss:$8 sps:$4 sm:$0xff]  }
  0x6b   :  { %836 = vmatpush2.bf16.msra.mxu0 %v1330_v14  ;;  %v1361_v14 = vld [vmem:[#allocation4 + $0x350] ss:$8 sps:$4 sm:$0xff]  }
  0x6c   :  { %1184 = vmatprep.subr.bf16.mxu0 %v1357_v10 }
  0xe6   :  { %v175_v28 = vpop.f32.mrf.mxu0 }
  0xe7   :  { %v176_v29 = vadd.f32 %v175_v28, %v68_v24  ;;  %v1370_v24 = vld [vmem:[#allocation4 + $0x290] ss:$8 sps:$4 sm:$0xff]  }
  0xe8   :  { %v177_v31 = vpop.f32.mrf.mxu0  ;;  %v216_v32 = vpop.f32.mrf.mxu1 }
  0xe9   :  { %v178_v33 = vadd.f32 %v177_v31, %v72_v26  ;;  %v217_v34 = vadd.f32 %v216_v32, %v76_v27  ;;  %1373 = vtanh.f32 %v176_v29  ;;  %v1372_v26 = vld [vmem:[#allocation4 + $0x280] ss:$8 sps:$4 sm:$0xff]  }
  0xea   :  { %v179_v35 = vpop.f32.mrf.mxu0  ;;  %v218_v36 = vpop.f32.mrf.mxu1 }
  0xeb   :  { %1375 = vtanh.f32 %v178_v33  ;;  %v219_v37 = vadd.f32 %v218_v36, %v80_v30  ;;  %v348_v35 = vld [vmem:[#allocation4 + $0x380] sm:$0x11] }
  0xec   :  { %1377 = vtanh.f32 %v217_v34  ;;  %v180_v38 = vpop.f32.mrf.mxu0  ;;  %v220_v39 = vpop.f32.mrf.mxu1  ;;  %v349_v36 = vunpack.c.l.bf16 %v348_v35 }
  0xed   :  { %1379 = vtanh.f32 %v219_v37  ;;  %v350_v37 = vunpack.c.h.bf16 %v348_v35 }
  0xee   :  { %v257_v40 = vpop.f32.mrf.mxu0  ;;  %v221_v41 = vpop.f32.mrf.mxu1  ;;  %v359_v38 = vrot.slane %v349_v36, %v1474_v21 }
  0xef   :  { %v258_v62 = vadd.f32 %v257_v40, %v84_v59  ;;  %v363_v39 = vrot.slane %v350_v37, %v1474_v21 }
  0xf0   :  { %v1212_v42 = vpop.f32.mrf.mxu0 }
  0xf1   :  { %1381 = vtanh.f32 %v258_v62 }
  0xf2   :  { %v260_v43 = vpop.f32.mrf.mxu0 }
  0xf4   :  { %v1213_v44 = vpop.f32.mrf.mxu0 }
  0xf6   :  { %v1374_v45 = vpop.eup %1373 }
  0xf7   :  { %v351_v52 = vpack.c.bf16 %v1374_v45, %v1374_v45 }
  0xf8   :  { %v1376_v46 = vpop.eup %1375 }
  0xf9   :  { %v1378_v47 = vpop.eup %1377  ;;  %v352_v48 = vpack.c.bf16 %v1376_v46, %v1376_v46 }
  0xfa   :  { %v1380_v51 = vpop.eup %1379  ;;  %v353_v53 = vpack.c.bf16 %v1378_v47, %v1378_v47 }
  0xfb   :  { %796 = vmatprep.mubr.bf16.mxu1 %v352_v48  ;;  %v354_v55 = vpack.c.bf16 %v1380_v51, %v1380_v51 }
  0xfc   :  { %797 = vmatmul.mubr.bf16.vlgmr.msra.gmra.mxu1 %v351_v52 }
  0xfd   :  { %847 = vmatpush1.bf16.msra.mxu1 %v1333_v49  ;;  %837 = vmatprep.mubr.bf16.mxu0 %v354_v55 }
  0xfe   :  { %838 = vmatmul.mubr.bf16.vlgmr.msra.gmra.mxu0 %v353_v53  ;;  %848 = vmatprep.subr.bf16.mxu1 %v1338_v54  ;;  %v1382_v7 = vpop.eup %1381  ;;  %v921_v54 = vld [vmem:[#allocation4 + $0x390] sm:$0x1] }
  0xff   :  { %878 = vmatprep.mubr.bf16.mxu1 %v1437_v0  ;;  %v1353_v0 = vld [vmem:[#allocation4 + $0x214] ss:$8 sps:$4 sm:$0xff]   ;;  %v355_v9 = vpack.c.bf16 %v1382_v7, %v1382_v7  ;;  %1185 = vmatpush3.bf16.msra.mxu0 %v1358_v11  ;;  %v922_v55 = vunpack.c.l.bf16 %v921_v54 }
 0x100   :  { %1186 = vmatprep.subr.bf16.mxu0 %v1359_v12 }
 0x101   :  { %849 = vmatpush1.bf16.msra.mxu1 %v1336_v57  ;;  %v928_v57 = vrot.slane %v922_v55, %v1474_v21 }
 0x102   :  { %850 = vmatprep.subr.bf16.mxu1 %v1341_v58 }
 0x103   :  { %1187 = vmatpush3.bf16.msra.mxu0 %v1360_v13 }
 0x104   :  { %1188 = vmatprep.subr.bf16.mxu0 %v1361_v14 }
 0x105   :  { %851 = vmatpush1.bf16.msra.mxu1 %v1339_v60 }
 0x106   :  { %852 = vmatprep.subr.bf16.mxu1 %v1344_v61 }
 0x107   :  { %1189 = vmatpush3.bf16.msra.mxu0 %v1362_v15 }
 0x108   :  { %1190 = vmatprep.subr.bf16.mxu0 %v1363_v16 }
 0x109   :  { %853 = vmatpush1.bf16.msra.mxu1 %v1342_v63 }
 0x10a   :  { %854 = vmatprep.subr.bf16.mxu1 %v1347_v1 }
 0x10b   :  { %1191 = vmatpush3.bf16.msra.mxu0 %v1364_v17 }
 0x10c   :  { %1192 = vmatprep.subr.bf16.mxu0 %v1365_v18 }
 0x10d   :  { %855 = vmatpush1.bf16.msra.mxu1 %v1345_v2 }
 0x10e   :  { %856 = vmatprep.subr.bf16.mxu1 %v1350_v3 }
 0x10f   :  { %1193 = vmatpush3.bf16.msra.mxu0 %v1366_v19 }
 0x110   :  { %1194 = vmatprep.subr.bf16.mxu0 %v1367_v20 }
 0x111   :  { %857 = vmatpush1.bf16.msra.mxu1 %v1348_v4 }
 0x112   :  { %858 = vmatprep.subr.bf16.mxu1 %v1353_v0 }
 0x113   :  { %1195 = vmatpush3.bf16.msra.mxu0 %v1368_v22 }
 0x114   :  { %1196 = vmatprep.subr.bf16.mxu0 %v1369_v23 }
 0x115   :  { %859 = vmatpush1.bf16.msra.mxu1 %v1351_v5 }
 0x116   :  { %860 = vmatprep.subr.bf16.mxu1 %v1356_v6 }
 0x117   :  { %1197 = vmatpush3.bf16.msra.mxu0 %v1370_v24 }
 0x118   :  { %1198 = vmatprep.subr.bf16.mxu0 %v1371_v25 }
 0x119   :  { %861 = vmatpush1.bf16.msra.mxu1 %v1354_v8 }
 0x11b   :  { %1199 = vmatpush3.bf16.msra.mxu0 %v1372_v26 }
 0x11c   :  { %879 = vmatmul.mubr.bf16.vlgmr.msra.gmra.mxu1 %v355_v9 }
 0x1bc   :  { %v798_v27 = vpop.f32.mrf.mxu1 }
 0x1bd   :  { %v799_v40 = vadd.f32 %v798_v27, %v359_v38 }
 0x1be   :  { %v800_v28 = vpop.f32.mrf.mxu1  ;;  %v839_v29 = vpop.f32.mrf.mxu0 }
 0x1bf   :  { %v801_v41 = vadd.f32 %v800_v28, %v363_v39  ;;  %v840_v42 = vadd.f32 %v839_v29, %v799_v40 }
 0x1c0   :  { %v802_v30 = vpop.f32.mrf.mxu1  ;;  %v841_v31 = vpop.f32.mrf.mxu0 }
 0x1c1   :  { %v842_v44 = vadd.f32 %v841_v31, %v801_v41 }
 0x1c2   :  { %v803_v32 = vpop.f32.mrf.mxu1  ;;  %v843_v33 = vpop.f32.mrf.mxu0 }
 0x1c4   :  { %v844_v34 = vpop.f32.mrf.mxu0 }
 0x1dc   :  { %v880_v43 = vpop.f32.mrf.mxu1 }
 0x1dd   :  { %v881_v45 = vadd.f32 %v880_v43, %v840_v42 }
 0x1de   :  { %v882_v46 = vpop.f32.mrf.mxu1 }
 0x1df   :  { %v883_v47 = vadd.f32 %v882_v46, %v842_v44  ;;  %1383 = vtanh.f32 %v881_v45 }
 0x1e0   :  { %v884_v48 = vpop.f32.mrf.mxu1 }
 0x1e1   :  { %1385 = vtanh.f32 %v883_v47 }
 0x1e2   :  { %v885_v49 = vpop.f32.mrf.mxu1 }
 0x1ec   :  { %v1384_v50 = vpop.eup %1383 }
 0x1ed   :  { %v923_v53 = vpack.c.bf16 %v1384_v50, %v1384_v50 }
 0x1ee   :  { %v1386_v51 = vpop.eup %1385 }
 0x1ef   :  { %v924_v52 = vpack.c.bf16 %v1386_v51, %v1386_v51 }
 0x1f1   :  { %1057 = vmatprep.mubr.bf16.mxu0 %v924_v52 }
 0x1f2   :  { %1058 = vmatmul.mubr.bf16.vlgmr.msra.gmra.mxu0 %v923_v53 }
 0x2b2   :  { %v1200_v56 = vpop.f32.mrf.mxu0 }
 0x2b4   :  { %v1201_v58 = vpop.f32.mrf.mxu0 }
 0x2b5   :  { %v1202_v59 = vadd.f32 %v1201_v58, %v1200_v56 }
 0x2b6   :  { %v1203_v60 = vpop.f32.mrf.mxu0 }
 0x2b7   :  { %v1060_v61 = vadd.f32 %v1202_v59, %v928_v57 }
 0x2b8   :  { %v1204_v62 = vpop.f32.mrf.mxu0 }
 0x2b9   :  { %1065 = vst [vmem:[%s1491_s3] sm:$0xff] %v1060_v61 }
 0x2ba   :  { %1070 = vsyncpa [#allocation3], 1 }
 0x2bb   :  { %1071 = vsyncpa [#allocation5], 1 }

</bundles_post_ra>
